<compile_context>
chip_gen: v7x
topology: tpu7x:2x2x1
jax: 0.10.0
libtpu: 0.0.40
codegen_flags: <defaults>
</compile_context>

<pallas_src>
import jax
import jax.numpy as jnp
from jax import lax
from jax.experimental import pallas as pl
from jax.experimental.pallas import tpu as pltpu

LOG_STD_MIN = -20.0
LOG_STD_MAX = 2.0
LEAKY_SLOPE = 0.01  # F.leaky_relu default negative_slope


def _leaky_relu(x):
    return jnp.where(x > 0, x, LEAKY_SLOPE * x)


def policy_net_kernel(x_ref, wb1_ref, w2_ref, w3h_ref, out_ref):
    x = x_ref[...]                       # (TB, 4)

    # Packed small params (all static slices of the (8,128) buffer).
    b1 = wb1_ref[4:5, :]                 # (1, 128)
    b2 = wb1_ref[5:6, :]                 # (1, 128)
    b3 = wb1_ref[6:7, 0:64]              # (1, 64)
    bhead = wb1_ref[7:8, 0:4]            # (1, 4)   [bmu | bstd]

    # Layer 1: K = 4 contraction as 4 broadcast FMAs on the VPU
    # (avoids an MXU push/pop at the head of the dependency chain).
    h1 = x[:, 0:1] * wb1_ref[0:1, :]
    h1 = h1 + x[:, 1:2] * wb1_ref[1:2, :]
    h1 = h1 + x[:, 2:3] * wb1_ref[2:3, :]
    h1 = h1 + x[:, 3:4] * wb1_ref[3:4, :]
    h1 = _leaky_relu(h1 + b1)                                          # (TB, 128)

    # Layer 2: 128x128 MXU matmul.
    h2 = _leaky_relu(
        jnp.dot(h1, w2_ref[...], preferred_element_type=jnp.float32) + b2)   # (TB, 128)

    # Layer 3: 128x64 MXU matmul.
    w3 = w3h_ref[0:128, :]               # (128, 64)
    h3 = _leaky_relu(
        jnp.dot(h2, w3, preferred_element_type=jnp.float32) + b3)            # (TB, 64)

    # Fused head: one 64x4 matmul produces [mu | log_std].
    whead = w3h_ref[128:192, 0:4]        # (64, 4)  [Wmu^T | Wstd^T]
    head = jnp.dot(h3, whead, preferred_element_type=jnp.float32) + bhead    # (TB, 4)

    # Clamp only the log_std half (columns 2:4).
    col = lax.broadcasted_iota(jnp.int32, head.shape, 1)
    head = jnp.where(col >= 2,
                     jnp.clip(head, LOG_STD_MIN, LOG_STD_MAX),
                     head)

    out_ref[...] = head.astype(out_ref.dtype)


def policy_net_forward(x, packed, *, tb=512):
    """x: (B, 4) float32. packed: dict with 'wb1' (8,128), 'w2' (128,128), 'w3h' (192,64).

    Returns (mu, log_std), each (B, 2).
    """
    B = x.shape[0]
    wb1, w2, w3h = packed["wb1"], packed["w2"], packed["w3h"]

    # Batch tile: full batch when small, otherwise a sublane-aligned tile.
    if B <= tb:
        TB = B
    else:
        TB = max(8, (tb // 8) * 8)
    Bp = ((B + TB - 1) // TB) * TB
    x_p = x if Bp == B else jnp.pad(x, ((0, Bp - B), (0, 0)))

    out = pl.pallas_call(
        policy_net_kernel,
        out_shape=jax.ShapeDtypeStruct((Bp, 4), jnp.float32),
        grid=(Bp // TB,),
        in_specs=[
            pl.BlockSpec((TB, 4), lambda i: (i, 0)),       # x tile, pipelined over batch
            pl.BlockSpec((8, 128), lambda i: (0, 0)),      # pinned: W1^T + all biases
            pl.BlockSpec((128, 128), lambda i: (0, 0)),    # pinned: W2^T
            pl.BlockSpec((192, 64), lambda i: (0, 0)),     # pinned: W3^T + head weights
        ],
        out_specs=pl.BlockSpec((TB, 4), lambda i: (i, 0)),
        compiler_params=pltpu.CompilerParams(
            dimension_semantics=("parallel",)),
    )(x_p, wb1, w2, w3h)

    out = out[:B]
    mu = out[:, 0:2]
    log_std = out[:, 2:4]
    return mu, log_std


def init_params(key):
    """Logical params mimicking nn.Linear default init (uniform +-1/sqrt(fan_in)).

    Weights stored transposed: (in_features, out_features). Biases 1-D.
    """
    dims = [("w1", "b1", 4, 128),
            ("w2", "b2", 128, 128),
            ("w3", "b3", 128, 64),
            ("wmu", "bmu", 64, 2),
            ("wstd", "bstd", 64, 2)]
    params = {}
    for wname, bname, fan_in, fan_out in dims:
        key, kw, kb = jax.random.split(key, 3)
        bound = 1.0 / jnp.sqrt(float(fan_in))
        params[wname] = jax.random.uniform(
            kw, (fan_in, fan_out), jnp.float32, minval=-bound, maxval=bound)
        params[bname] = jax.random.uniform(
            kb, (fan_out,), jnp.float32, minval=-bound, maxval=bound)
    return params


def pack_params(params):
    """Pack the 11 logical params into 3 HBM buffers for the kernel."""
    wb1 = jnp.zeros((8, 128), jnp.float32)
    wb1 = wb1.at[0:4, :].set(params["w1"])
    wb1 = wb1.at[4, :].set(params["b1"])
    wb1 = wb1.at[5, :].set(params["b2"])
    wb1 = wb1.at[6, 0:64].set(params["b3"])
    wb1 = wb1.at[7, 0:2].set(params["bmu"])
    wb1 = wb1.at[7, 2:4].set(params["bstd"])

    w2 = params["w2"].astype(jnp.float32)

    w3h = jnp.zeros((192, 64), jnp.float32)
    w3h = w3h.at[0:128, :].set(params["w3"])
    w3h = w3h.at[128:192, 0:2].set(params["wmu"])
    w3h = w3h.at[128:192, 2:4].set(params["wstd"])

    return {"wb1": wb1, "w2": w2, "w3h": w3h}


def reference_forward(x, params):
    """Plain-JAX reference of the same math (highest-precision dots)."""
    hp = jax.lax.Precision.HIGHEST
    h = _leaky_relu(jnp.dot(x, params["w1"], precision=hp) + params["b1"])
    h = _leaky_relu(jnp.dot(h, params["w2"], precision=hp) + params["b2"])
    h = _leaky_relu(jnp.dot(h, params["w3"], precision=hp) + params["b3"])
    mu = jnp.dot(h, params["wmu"], precision=hp) + params["bmu"]
    log_std = jnp.clip(jnp.dot(h, params["wstd"], precision=hp) + params["bstd"],
                       LOG_STD_MIN, LOG_STD_MAX)
    return mu, log_std


if __name__ == "__main__":
    key = jax.random.PRNGKey(0)
    key, kx1, kx2 = jax.random.split(key, 3)

    params = init_params(key)
    packed = pack_params(params)

    # Case 1: tiny batch (single grid point).
    B1 = 8
    x1 = jax.random.normal(kx1, (B1, 4), jnp.float32)
    mu1, ls1 = policy_net_forward(x1, packed)
    mu1 = jax.block_until_ready(mu1)
    ls1 = jax.block_until_ready(ls1)
    mu1_ref, ls1_ref = reference_forward(x1, params)
    assert mu1.shape == (B1, 2) and ls1.shape == (B1, 2)
    assert jnp.allclose(mu1, mu1_ref, atol=1e-4, rtol=1e-4)
    assert jnp.allclose(ls1, ls1_ref, atol=1e-4, rtol=1e-4)

    # Case 2: larger batch exercising the batch grid + padding path.
    B2 = 200
    x2 = jax.random.normal(kx2, (B2, 4), jnp.float32)
    mu2, ls2 = policy_net_forward(x2, packed, tb=64)
    mu2 = jax.block_until_ready(mu2)
    ls2 = jax.block_until_ready(ls2)
    mu2_ref, ls2_ref = reference_forward(x2, params)
    assert mu2.shape == (B2, 2) and ls2.shape == (B2, 2)
    assert jnp.allclose(mu2, mu2_ref, atol=1e-4, rtol=1e-4)
    assert jnp.allclose(ls2, ls2_ref, atol=1e-4, rtol=1e-4)

    print("KERNEL_OK")
</pallas_src>

<mosaic_0001>
module attributes {stable_mosaic.version = 11 : i64} {
  func.func @policy_net_kernel(%arg0: i32, %arg1: memref<8x4xf32, #tpu.memory_space<vmem>>, %arg2: memref<8x128xf32, #tpu.memory_space<vmem>>, %arg3: memref<128x128xf32, #tpu.memory_space<vmem>>, %arg4: memref<192x64xf32, #tpu.memory_space<vmem>>, %arg5: memref<8x4xf32, #tpu.memory_space<vmem>>) attributes {dimension_semantics = [#tpu.dimension_semantics<parallel>], iteration_bounds = array<i64: 1>, scalar_prefetch = 0 : i64, scratch_operands = 0 : i64, tpu.core_type = #tpu.core_type<tc>, window_params = [{transform_indices = @transform_0, window_bounds = array<i64: 8, 4>}, {pipeline_mode = #tpu.pipeline_mode<synchronous>, transform_indices = @transform_1, window_bounds = array<i64: 8, 128>}, {pipeline_mode = #tpu.pipeline_mode<synchronous>, transform_indices = @transform_2, window_bounds = array<i64: 128, 128>}, {pipeline_mode = #tpu.pipeline_mode<synchronous>, transform_indices = @transform_3, window_bounds = array<i64: 192, 64>}, {transform_indices = @transform_4, window_bounds = array<i64: 8, 4>}]} {
    %c0 = arith.constant 0 : index
    %c0_0 = arith.constant 0 : index
    %0 = vector.load %arg1[%c0, %c0_0] : memref<8x4xf32, #tpu.memory_space<vmem>>, vector<8x4xf32>
    %c4 = arith.constant 4 : index
    %c0_1 = arith.constant 0 : index
    %1 = vector.load %arg2[%c4, %c0_1] : memref<8x128xf32, #tpu.memory_space<vmem>>, vector<1x128xf32>
    %c5 = arith.constant 5 : index
    %c0_2 = arith.constant 0 : index
    %2 = vector.load %arg2[%c5, %c0_2] : memref<8x128xf32, #tpu.memory_space<vmem>>, vector<1x128xf32>
    %c6 = arith.constant 6 : index
    %c0_3 = arith.constant 0 : index
    %3 = vector.load %arg2[%c6, %c0_3] : memref<8x128xf32, #tpu.memory_space<vmem>>, vector<1x64xf32>
    %c7 = arith.constant 7 : index
    %c0_4 = arith.constant 0 : index
    %4 = vector.load %arg2[%c7, %c0_4] : memref<8x128xf32, #tpu.memory_space<vmem>>, vector<1x4xf32>
    %5 = vector.extract_strided_slice %0 {offsets = [0, 0], sizes = [8, 1], strides = [1, 1]} : vector<8x4xf32> to vector<8x1xf32>
    %c0_5 = arith.constant 0 : index
    %c0_6 = arith.constant 0 : index
    %6 = vector.load %arg2[%c0_5, %c0_6] : memref<8x128xf32, #tpu.memory_space<vmem>>, vector<1x128xf32>
    %7 = vector.broadcast %5 : vector<8x1xf32> to vector<8x128xf32>
    %8 = vector.broadcast %6 : vector<1x128xf32> to vector<8x128xf32>
    %9 = arith.mulf %7, %8 : vector<8x128xf32>
    %10 = vector.extract_strided_slice %0 {offsets = [0, 1], sizes = [8, 1], strides = [1, 1]} : vector<8x4xf32> to vector<8x1xf32>
    %c1 = arith.constant 1 : index
    %c0_7 = arith.constant 0 : index
    %11 = vector.load %arg2[%c1, %c0_7] : memref<8x128xf32, #tpu.memory_space<vmem>>, vector<1x128xf32>
    %12 = vector.broadcast %10 : vector<8x1xf32> to vector<8x128xf32>
    %13 = vector.broadcast %11 : vector<1x128xf32> to vector<8x128xf32>
    %14 = arith.mulf %12, %13 : vector<8x128xf32>
    %15 = arith.addf %9, %14 : vector<8x128xf32>
    %16 = vector.extract_strided_slice %0 {offsets = [0, 2], sizes = [8, 1], strides = [1, 1]} : vector<8x4xf32> to vector<8x1xf32>
    %c2 = arith.constant 2 : index
    %c0_8 = arith.constant 0 : index
    %17 = vector.load %arg2[%c2, %c0_8] : memref<8x128xf32, #tpu.memory_space<vmem>>, vector<1x128xf32>
    %18 = vector.broadcast %16 : vector<8x1xf32> to vector<8x128xf32>
    %19 = vector.broadcast %17 : vector<1x128xf32> to vector<8x128xf32>
    %20 = arith.mulf %18, %19 : vector<8x128xf32>
    %21 = arith.addf %15, %20 : vector<8x128xf32>
    %22 = vector.extract_strided_slice %0 {offsets = [0, 3], sizes = [8, 1], strides = [1, 1]} : vector<8x4xf32> to vector<8x1xf32>
    %c3 = arith.constant 3 : index
    %c0_9 = arith.constant 0 : index
    %23 = vector.load %arg2[%c3, %c0_9] : memref<8x128xf32, #tpu.memory_space<vmem>>, vector<1x128xf32>
    %24 = vector.broadcast %22 : vector<8x1xf32> to vector<8x128xf32>
    %25 = vector.broadcast %23 : vector<1x128xf32> to vector<8x128xf32>
    %26 = arith.mulf %24, %25 : vector<8x128xf32>
    %27 = arith.addf %21, %26 : vector<8x128xf32>
    %28 = vector.broadcast %1 : vector<1x128xf32> to vector<8x128xf32>
    %29 = arith.addf %27, %28 : vector<8x128xf32>
    %cst = arith.constant 0.000000e+00 : f32
    %30 = vector.broadcast %cst : f32 to vector<8x128xf32>
    %31 = arith.cmpf ogt, %29, %30 : vector<8x128xf32>
    %cst_10 = arith.constant 0.00999999977 : f32
    %32 = vector.broadcast %cst_10 : f32 to vector<8x128xf32>
    %33 = arith.mulf %32, %29 : vector<8x128xf32>
    %34 = arith.select %31, %29, %33 : vector<8x128xi1>, vector<8x128xf32>
    %c0_11 = arith.constant 0 : index
    %c0_12 = arith.constant 0 : index
    %35 = vector.load %arg3[%c0_11, %c0_12] : memref<128x128xf32, #tpu.memory_space<vmem>>, vector<128x128xf32>
    %cst_13 = arith.constant dense<0.000000e+00> : vector<8x128xf32>
    %36 = tpu.matmul %34, %35, %cst_13 {dimension_numbers = #tpu.dot_dimension_numbers<[1], [0], [0], [1], [0, 0, 1, 1], [], []>} : vector<8x128xf32>, vector<128x128xf32>, vector<8x128xf32> -> vector<8x128xf32>
    %37 = vector.broadcast %2 : vector<1x128xf32> to vector<8x128xf32>
    %38 = arith.addf %36, %37 : vector<8x128xf32>
    %cst_14 = arith.constant 0.000000e+00 : f32
    %39 = vector.broadcast %cst_14 : f32 to vector<8x128xf32>
    %40 = arith.cmpf ogt, %38, %39 : vector<8x128xf32>
    %cst_15 = arith.constant 0.00999999977 : f32
    %41 = vector.broadcast %cst_15 : f32 to vector<8x128xf32>
    %42 = arith.mulf %41, %38 : vector<8x128xf32>
    %43 = arith.select %40, %38, %42 : vector<8x128xi1>, vector<8x128xf32>
    %c0_16 = arith.constant 0 : index
    %c0_17 = arith.constant 0 : index
    %44 = vector.load %arg4[%c0_16, %c0_17] : memref<192x64xf32, #tpu.memory_space<vmem>>, vector<128x64xf32>
    %cst_18 = arith.constant dense<0.000000e+00> : vector<8x64xf32>
    %45 = tpu.matmul %43, %44, %cst_18 {dimension_numbers = #tpu.dot_dimension_numbers<[1], [0], [0], [1], [0, 0, 1, 1], [], []>} : vector<8x128xf32>, vector<128x64xf32>, vector<8x64xf32> -> vector<8x64xf32>
    %46 = vector.broadcast %3 : vector<1x64xf32> to vector<8x64xf32>
    %47 = arith.addf %45, %46 : vector<8x64xf32>
    %cst_19 = arith.constant 0.000000e+00 : f32
    %48 = vector.broadcast %cst_19 : f32 to vector<8x64xf32>
    %49 = arith.cmpf ogt, %47, %48 : vector<8x64xf32>
    %cst_20 = arith.constant 0.00999999977 : f32
    %50 = vector.broadcast %cst_20 : f32 to vector<8x64xf32>
    %51 = arith.mulf %50, %47 : vector<8x64xf32>
    %52 = arith.select %49, %47, %51 : vector<8x64xi1>, vector<8x64xf32>
    %c128 = arith.constant 128 : index
    %c0_21 = arith.constant 0 : index
    %53 = vector.load %arg4[%c128, %c0_21] : memref<192x64xf32, #tpu.memory_space<vmem>>, vector<64x4xf32>
    %cst_22 = arith.constant dense<0.000000e+00> : vector<8x4xf32>
    %54 = tpu.matmul %52, %53, %cst_22 {dimension_numbers = #tpu.dot_dimension_numbers<[1], [0], [0], [1], [0, 0, 1, 1], [], []>} : vector<8x64xf32>, vector<64x4xf32>, vector<8x4xf32> -> vector<8x4xf32>
    %55 = vector.broadcast %4 : vector<1x4xf32> to vector<8x4xf32>
    %56 = arith.addf %54, %55 : vector<8x4xf32>
    %57 = tpu.iota {dimensions = array<i32: 1>} : vector<8x4xi32>
    %c2_i32 = arith.constant 2 : i32
    %58 = vector.broadcast %c2_i32 : i32 to vector<8x4xi32>
    %59 = arith.cmpi sge, %57, %58 : vector<8x4xi32>
    %cst_23 = arith.constant -2.000000e+01 : f32
    %cst_24 = arith.constant 2.000000e+00 : f32
    %60 = vector.broadcast %cst_23 : f32 to vector<8x4xf32>
    %61 = arith.maximumf %60, %56 : vector<8x4xf32>
    %62 = vector.broadcast %cst_24 : f32 to vector<8x4xf32>
    %63 = arith.minimumf %62, %61 : vector<8x4xf32>
    %64 = arith.select %59, %63, %56 : vector<8x4xi1>, vector<8x4xf32>
    %c0_25 = arith.constant 0 : index
    %c0_26 = arith.constant 0 : index
    %65 = vector.load %arg5[%c0_25, %c0_26] : memref<8x4xf32, #tpu.memory_space<vmem>>, vector<8x4xf32>
    tpu.vector_store %arg5[%c0_25, %c0_26], %64 {strides = array<i32>} : memref<8x4xf32, #tpu.memory_space<vmem>>, vector<8x4xf32>,
    return
  }
  func.func @transform_0(%arg0: i32) -> (i32, i32) {
    %c0_i32 = arith.constant 0 : i32
    %c0_i32_0 = arith.constant 0 : i32
    return %arg0, %c0_i32 : i32, i32
  }
  func.func @transform_1(%arg0: i32) -> (i32, i32) {
    %c0_i32 = arith.constant 0 : i32
    %c0_i32_0 = arith.constant 0 : i32
    %c0_i32_1 = arith.constant 0 : i32
    return %c0_i32, %c0_i32_0 : i32, i32
  }
  func.func @transform_2(%arg0: i32) -> (i32, i32) {
    %c0_i32 = arith.constant 0 : i32
    %c0_i32_0 = arith.constant 0 : i32
    %c0_i32_1 = arith.constant 0 : i32
    return %c0_i32, %c0_i32_0 : i32, i32
  }
  func.func @transform_3(%arg0: i32) -> (i32, i32) {
    %c0_i32 = arith.constant 0 : i32
    %c0_i32_0 = arith.constant 0 : i32
    %c0_i32_1 = arith.constant 0 : i32
    return %c0_i32, %c0_i32_0 : i32, i32
  }
  func.func @transform_4(%arg0: i32) -> (i32, i32) {
    %c0_i32 = arith.constant 0 : i32
    %c0_i32_0 = arith.constant 0 : i32
    return %arg0, %c0_i32 : i32, i32
  }
}

</mosaic_0001>

<bundles_post_ra>
// kernel: tpu_custom_call.1
= control target key start
LH: loop header
LB: loop body
LE: loop exit
PB: predicated region body
PF: predicated region fallthrough
CT: control target
= control target key end

     0   :  { %v571_v0 = vmov 0   ;;  %v572_v2 = vmov 2   ;;  %v573_v8 = vmov 0.0|0.0   ;;  %v574_v12 = vmov 1   ;;  %s779_s0 = inlined_call_operand.vmem [shape: f32[8,4], index: 0, kind: input, shape index: {}]   ;;  %s780_s2 = inlined_call_operand.vmem [shape: f32[128,128], index: 2, kind: input, shape index: {}]   ;;  %s781_s3 = inlined_call_operand.vmem [shape: f32[192,64], index: 3, kind: input, shape index: {}]   ;;  %s782_s1 = inlined_call_operand.vmem [shape: f32[8,128], index: 1, kind: input, shape index: {}]   ;;  %s783_s4 = inlined_call_operand.vmem [shape: f32[8,4], index: 4, kind: output, shape index: {}]  }
   0x1   :  { %566 = vset.pattern.permute.xlu0 %v571_v0  ;;  %v17_v1 = vld [vmem:[%s779_s0] sm:$0xff]  ;;  %568 = vset.pattern.permute.xlu1 %v572_v2  ;;  %v75_v4 = vld [vmem:[%s780_s2 + $0x8] sm:$0xff]  ;;  %v76_v6 = vld [vmem:[%s780_s2 + $0x10] sm:$0xff]  ;;  %v575_v13 = vmov 3   ;;  %vm576_vm0 = vmmov 0   ;;  %v577_v21 = vmov 0.0  }
   0x2   :  { %v74_v3 = vld [vmem:[%s780_s2] sm:$0xff]  ;;  %25 = vperm.xlu0 %566, %v17_v1   ;;  %46 = vperm.xlu1 %568, %v17_v1   ;;  %v77_v7 = vld [vmem:[%s780_s2 + $0x18] sm:$0xff]  ;;  %v79_v11 = vld [vmem:[%s780_s2 + $0x28] sm:$0xff]  ;;  %vm272_vm4 = vcmask 523264   ;;  %vm352_vm6 = vcmask 31744  }
   0x3   :  { %v500_v5 = vpack.c.bf16 %v75_v4, %v74_v3  ;;  %499 = vmatprep.subr.bf16.mxu0 %v573_v8  ;;  %523 = vmatprep.subr.bf16.mxu1 %v573_v8  ;;  %v503_v9 = vpack.c.bf16 %v77_v7, %v76_v6  ;;  %v78_v10 = vld [vmem:[%s780_s2 + $0x20] sm:$0xff]  ;;  %v80_v15 = vld [vmem:[%s780_s2 + $0x30] sm:$0xff]  ;;  %v81_v16 = vld [vmem:[%s780_s2 + $0x38] sm:$0xff] }
   0x4   :  { %v506_v14 = vpack.c.bf16 %v79_v11, %v78_v10  ;;  %v509_v17 = vpack.c.bf16 %v81_v16, %v80_v15  ;;  %v82_v18 = vld [vmem:[%s780_s2 + $0x40] sm:$0xff]  ;;  %v83_v19 = vld [vmem:[%s780_s2 + $0x48] sm:$0xff]  ;;  %442 = vmatprep.mubr.msk.f32.mxu0 %vm576_vm0, %v577_v21  ;;  %v84_v22 = vld [vmem:[%s780_s2 + $0x50] sm:$0xff]  ;;  %477 = vmatprep.mubr.msk.f32.mxu1 %vm576_vm0, %v577_v21 }
   0x5   :  { %501 = vmatpush3.bf16.msra.mxu0 %v500_v5  ;;  %v512_v20 = vpack.c.bf16 %v83_v19, %v82_v18  ;;  %v85_v23 = vld [vmem:[%s780_s2 + $0x58] sm:$0xff]  ;;  %v86_v25 = vld [vmem:[%s780_s2 + $0x60] sm:$0xff]  ;;  %v87_v26 = vld [vmem:[%s780_s2 + $0x68] sm:$0xff] }
   0x6   :  { %502 = vmatprep.subr.bf16.mxu0 %v573_v8  ;;  %567 = vset.pattern.permute.xlu0 %v574_v12  ;;  %v515_v24 = vpack.c.bf16 %v85_v23, %v84_v22  ;;  %v167_v27 = vld [vmem:[%s781_s3] sm:$0xff]  ;;  %v168_v28 = vld [vmem:[%s781_s3 + $0x8] sm:$0xff]  ;;  %v169_v29 = vld [vmem:[%s781_s3 + $0x10] sm:$0xff]  ;;  %v518_v32 = vpack.c.bf16 %v87_v26, %v86_v25 }
   0x7   :  { %569 = vset.pattern.permute.xlu1 %v575_v13  ;;  %35 = vperm.xlu0 %567, %v17_v1   ;;  %v524_v30 = vpack.c.bf16 %v168_v28, %v167_v27  ;;  %v170_v31 = vld [vmem:[%s781_s3 + $0x18] sm:$0xff]  ;;  %v88_v33 = vld [vmem:[%s780_s2 + $0x70] sm:$0xff]  ;;  %v171_v36 = vld [vmem:[%s781_s3 + $0x20] sm:$0xff] }
   0x8   :  { %57 = vperm.xlu1 %569, %v17_v1   ;;  %v527_v34 = vpack.c.bf16 %v170_v31, %v169_v29  ;;  %v89_v35 = vld [vmem:[%s780_s2 + $0x78] sm:$0xff]  ;;  %v172_v37 = vld [vmem:[%s781_s3 + $0x28] sm:$0xff]  ;;  %v173_v40 = vld [vmem:[%s781_s3 + $0x30] sm:$0xff] }
   0x9   :  { %504 = vmatpush3.bf16.msra.mxu0 %v503_v9  ;;  %525 = vmatpush3.bf16.msra.mxu1 %v524_v30  ;;  %v521_v38 = vpack.c.bf16 %v89_v35, %v88_v33  ;;  %v530_v39 = vpack.c.bf16 %v172_v37, %v171_v36  ;;  %v174_v41 = vld [vmem:[%s781_s3 + $0x38] sm:$0xff]  ;;  %v175_v43 = vld [vmem:[%s781_s3 + $0x40] sm:$0xff]  ;;  %v176_v44 = vld [vmem:[%s781_s3 + $0x48] sm:$0xff] }
   0xa   :  { %505 = vmatprep.subr.bf16.mxu0 %v573_v8  ;;  %526 = vmatprep.subr.bf16.mxu1 %v573_v8  ;;  %v533_v42 = vpack.c.bf16 %v174_v41, %v173_v40  ;;  %v536_v45 = vpack.c.bf16 %v176_v44, %v175_v43  ;;  %v177_v46 = vld [vmem:[%s781_s3 + $0x50] sm:$0xff]  ;;  %v178_v47 = vld [vmem:[%s781_s3 + $0x58] sm:$0xff]  ;;  %v179_v49 = vld [vmem:[%s781_s3 + $0x60] sm:$0xff] }
   0xb   :  { %570 = vset.pattern.permute.xlu0 %v575_v13  ;;  %v539_v48 = vpack.c.bf16 %v178_v47, %v177_v46  ;;  %v180_v50 = vld [vmem:[%s781_s3 + $0x68] sm:$0xff]  ;;  %v358_v54 = vld [vmem:[%s782_s1] ss:$0 sm:$0xff]  ;;  %v359_v55 = vld [vmem:[%s782_s1 + $0x1] ss:$0 sm:$0xff] }
   0xc   :  { %v542_v51 = vpack.c.bf16 %v180_v50, %v179_v49  ;;  %v360_v56 = vld [vmem:[%s782_s1 + $0x2] ss:$0 sm:$0xff]  ;;  %v361_v58 = vld [vmem:[%s782_s1 + $0x3] ss:$0 sm:$0xff]  ;;  %v362_v2 = vld [vmem:[%s782_s1 + $0x4] ss:$0 sm:$0xff] }
   0xd   :  { %507 = vmatpush3.bf16.msra.mxu0 %v506_v14  ;;  %528 = vmatpush3.bf16.msra.mxu1 %v527_v34  ;;  %v181_v7 = vld [vmem:[%s781_s3 + $0x70] sm:$0xff]  ;;  %v182_v9 = vld [vmem:[%s781_s3 + $0x78] sm:$0xff]  ;;  %v260_v11 = vld [vmem:[%s781_s3 + $0x80] sm:$0xff]  ;;  %v346_v34 = vlaneseq }
   0xe   :  { %508 = vmatprep.subr.bf16.mxu0 %v573_v8  ;;  %529 = vmatprep.subr.bf16.mxu1 %v573_v8  ;;  %v545_v10 = vpack.c.bf16 %v182_v9, %v181_v7  ;;  %v261_v12 = vld [vmem:[%s781_s3 + $0x88] sm:$0xff]  ;;  %v262_v13 = vld [vmem:[%s781_s3 + $0x90] sm:$0xff]  ;;  %v263_v15 = vld [vmem:[%s781_s3 + $0x98] sm:$0xff] }
   0xf   :  { %v548_v14 = vpack.c.bf16 %v261_v12, %v260_v11  ;;  %v551_v16 = vpack.c.bf16 %v263_v15, %v262_v13  ;;  %v265_v18 = vld [vmem:[%s781_s3 + $0xa8] sm:$0xff]  ;;  %v266_v26 = vld [vmem:[%s781_s3 + $0xb0] sm:$0xff]  ;;  %v267_v27 = vld [vmem:[%s781_s3 + $0xb8] sm:$0xff]  ;;  %v347_v37 = vand.u32 127, %v346_v34 }
  0x10   :  { %v364_v28 = vld [vmem:[%s782_s1 + $0x6] ss:$0 sm:$0xff]  ;;  %v365_v35 = vld [vmem:[%s782_s1 + $0x7] ss:$0 sm:$0xff] }
  0x11   :  { %510 = vmatpush3.bf16.msra.mxu0 %v509_v17  ;;  %531 = vmatpush3.bf16.msra.mxu1 %v530_v39  ;;  %v264_v17 = vld [vmem:[%s781_s3 + $0xa0] sm:$0xff]  ;;  %vm348_vm5 = vcmp.ge.s32.totalorder %v347_v37, 2 }
  0x12   :  { %511 = vmatprep.subr.bf16.mxu0 %v573_v8  ;;  %532 = vmatprep.subr.bf16.mxu1 %v573_v8  ;;  %v554_v19 = vpack.c.bf16 %v265_v18, %v264_v17 }
  0x15   :  { %513 = vmatpush3.bf16.msra.mxu0 %v512_v20  ;;  %534 = vmatpush3.bf16.msra.mxu1 %v533_v42  ;;  %v363_v20 = vld [vmem:[%s782_s1 + $0x5] ss:$0 sm:$0xff] }
  0x16   :  { %514 = vmatprep.subr.bf16.mxu0 %v573_v8  ;;  %535 = vmatprep.subr.bf16.mxu1 %v573_v8 }
  0x19   :  { %516 = vmatpush3.bf16.msra.mxu0 %v515_v24  ;;  %537 = vmatpush3.bf16.msra.mxu1 %v536_v45 }
  0x1a   :  { %517 = vmatprep.subr.bf16.mxu0 %v573_v8  ;;  %538 = vmatprep.subr.bf16.mxu1 %v573_v8 }
  0x1d   :  { %519 = vmatpush3.bf16.msra.mxu0 %v518_v32  ;;  %540 = vmatpush3.bf16.msra.mxu1 %v539_v48 }
  0x1e   :  { %520 = vmatprep.subr.bf16.mxu0 %v573_v8  ;;  %541 = vmatprep.subr.bf16.mxu1 %v573_v8 }
  0x21   :  { %522 = vmatpush3.bf16.msra.mxu0 %v521_v38  ;;  %543 = vmatpush3.bf16.msra.mxu1 %v542_v51 }
  0x22   :  { %547 = vmatprep.subr.bf16.mxu0 %v573_v8  ;;  %544 = vmatprep.subr.bf16.mxu1 %v573_v8 }
  0x25   :  { %546 = vmatpush3.bf16.msra.mxu1 %v545_v10 }
  0x81   :  { %v26_v52 = vpop.permute.xlu0 %25  ;;  %v47_v53 = vpop.permute.xlu1 %46 }
  0x82   :  { %v32_v60 = vmul.f32 %v358_v54, %v26_v52  ;;  %v53_v62 = vmul.f32 %v360_v56, %v47_v53 }
  0x86   :  { %v36_v57 = vpop.permute.xlu0 %35 }
  0x87   :  { %v58_v59 = vpop.permute.xlu1 %57  ;;  %v42_v61 = vmul.f32 %v359_v55, %v36_v57 }
  0x88   :  { %v64_v0 = vmul.f32 %v361_v58, %v58_v59 }
  0x89   :  { %v43_v63 = vadd.f32 %v42_v61, %v32_v60 }
  0x8b   :  { %v54_v1 = vadd.f32 %v53_v62, %v43_v63 }
  0x8d   :  { %v65_v3 = vadd.f32 %v64_v0, %v54_v1 }
  0x8f   :  { %v70_v4 = vadd.f32 %v362_v2, %v65_v3 }
  0x91   :  { %vm71_vm1 = vcmp.gt.f32.partialorder %v70_v4, 0.0  ;;  %v72_v5 = vmul.f32 0.01, %v70_v4 }
  0x93   :  { %v73_v6 = vsel %vm71_vm1, %v70_v4, %v72_v5 }
  0x94   :  { %443 = vmatmul.mubr.f32.vlgmr.msra.gmra.mrb[0].mxu0 %v73_v6 }
  0x95   :  { %496 = vmatprep.mubr.msk.f32.mxu0 %vm576_vm0, %v577_v21  ;;  %549 = vmatpush3.bf16.msra.mxu0 %v548_v14 }
  0x96   :  { %550 = vmatprep.subr.bf16.mxu0 %v573_v8 }
  0x99   :  { %552 = vmatpush3.bf16.msra.mxu0 %v551_v16 }
  0x9a   :  { %553 = vmatprep.subr.bf16.mxu0 %v573_v8 }
  0x9d   :  { %555 = vmatpush3.bf16.msra.mxu0 %v554_v19 }
  0x9e   :  { %556 = vmatprep.subr.bf16.mxu0 %v573_v8  ;;  %v557_v8 = vpack.c.bf16 %v267_v27, %v266_v26 }
  0xa1   :  { %558 = vmatpush3.bf16.msra.mxu0 %v557_v8 }
 0x167   :  { %v160_v21 = vpop.f32.mrb[0].mxu0 }
 0x168   :  { %v161_v22 = vadd.f32 %v363_v20, %v160_v21  ;;  %v444_v23 = vpop.f32.mrb[1].mxu0 }
 0x16a   :  { %v165_v24 = vmul.f32 0.01, %v161_v22  ;;  %vm164_vm2 = vcmp.gt.f32.partialorder %v161_v22, 0.0 }
 0x16c   :  { %v166_v25 = vsel %vm164_vm2, %v161_v22, %v165_v24 }
 0x16d   :  { %478 = vmatmul.mubr.f32.vlgmr.msra.gmra.mrb[0].mxu1 %v166_v25 }
 0x240   :  { %v253_v29 = vpop.f32.mrb[0].mxu1 }
 0x241   :  { %v254_v30 = vadd.f32 %v364_v28, %v253_v29  ;;  %v479_v31 = vpop.f32.mrb[1].mxu1 }
 0x243   :  { %vm257_vm3 = vcmp.gt.f32.partialorder %v254_v30, 0.0  ;;  %v258_v32 = vmul.f32 0.01, %v254_v30 }
 0x245   :  { %v259_v33 = vsel %vm257_vm3, %v254_v30, %v258_v32 }
 0x246   :  { %497 = vmatmul.mubr.msk.f32.vlgmr.msra.gmra.mrb[2].mxu0 %vm272_vm4, %v259_v33 }
 0x319   :  { %v342_v36 = vpop.f32.mrb[2].mxu0 }
 0x31a   :  { %v343_v38 = vadd.f32 %v365_v35, %v342_v36  ;;  %v498_v39 = vpop.f32.mrb[3].mxu0 }
 0x31c   :  { %v349_v40 = vmax.f32 %v343_v38, -20.0 }
 0x31e   :  { %v350_v41 = vmin.f32 %v349_v40, 2.0 }
 0x320   :  { %v351_v42 = vsel %vm348_vm5, %v350_v41, %v343_v38 }
 0x321   :  { %353 = vst.msk [vmem:[%s783_s4] sm:$0xff] %vm352_vm6, %v351_v42 }

</bundles_post_ra>
